<compile_context>
chip_gen: v5e
topology: v5e:2x2
jax: 0.10.0
libtpu: 0.0.40
codegen_flags: <defaults>
</compile_context>

<pallas_src>
import functools

import jax
import jax.numpy as jnp
from jax import lax
from jax.experimental import pallas as pl
from jax.experimental.pallas import tpu as pltpu


VMEM_LIMIT = 48 * 1024 * 1024        # below v7x's 64 MiB physical VMEM
VMEM_BUDGET = 32 * 1024 * 1024       # working budget used to derive chunk size


def _round_up(n, m):
    return (n + m - 1) // m * m


# ---------------------------------------------------------------------------
# Kernel A: batched feature MLP + LSTM input->hidden gate projection.
#   gates_x = (relu(x @ w1 + b1) @ w2 + b2) @ wih + (bih + bhh)   (bf16 out)
# rows = flattened (time, batch); fully parallel over row tiles.
# ---------------------------------------------------------------------------
def _gates_x_kernel(x_ref, w1_ref, b1_ref, w2_ref, b2_ref, wih_ref, bg_ref,
                    gx_ref):
    x = x_ref[...].astype(jnp.bfloat16)
    f1 = jnp.dot(x, w1_ref[...], preferred_element_type=jnp.float32) + b1_ref[...]
    f1 = jnp.maximum(f1, 0.0)
    feat = jnp.dot(f1.astype(jnp.bfloat16), w2_ref[...],
                   preferred_element_type=jnp.float32) + b2_ref[...]
    gx = jnp.dot(feat.astype(jnp.bfloat16), wih_ref[...],
                 preferred_element_type=jnp.float32) + bg_ref[...]
    gx_ref[...] = gx.astype(gx_ref.dtype)


# ---------------------------------------------------------------------------
# Kernel B: LSTM recurrence over a time chunk (per batch block) + dueling
# heads on the chunk's h-slab.  h/c carried across chunks in VMEM scratch.
# Gate column order is [i, f, o, g] (permuted in the wrapper).
# ---------------------------------------------------------------------------
def _recurrence_kernel(gx_ref, h0_ref, c0_ref, whh_ref, whead_ref, bhead_ref,
                       q_ref, hT_ref, cT_ref,
                       h_scr, c_scr, hs_scr,
                       *, seq_len, chunk_steps, hidden, n_actions, head_w,
                       mask_tail, unroll):
    chunk = pl.program_id(1)
    H = hidden

    @pl.when(chunk == 0)
    def _():
        h_scr[...] = h0_ref[...]
        c_scr[...] = c0_ref[...]

    whh = whh_ref[...]  # (H, 4H) bf16, resident for the whole call

    def step(t, carry):
        gx = gx_ref[t]                               # (Bblk, 4H) bf16
        h_prev = h_scr[...]
        c_prev = c_scr[...]
        gates = jnp.dot(h_prev.astype(jnp.bfloat16), whh,
                        preferred_element_type=jnp.float32) + gx
        # Gate order [i, f, o, g]: sigmoid on 3H cols, tanh on the last H.
        sg = jax.nn.sigmoid(gates[:, :3 * H])
        g_g = jnp.tanh(gates[:, 3 * H:])
        i_g = sg[:, 0 * H:1 * H]
        f_g = sg[:, 1 * H:2 * H]
        o_g = sg[:, 2 * H:3 * H]
        c_new = f_g * c_prev + i_g * g_g
        h_new = o_g * jnp.tanh(c_new)
        if mask_tail:
            valid = (chunk * chunk_steps + t) < seq_len
            h_new = jnp.where(valid, h_new, h_prev)
            c_new = jnp.where(valid, c_new, c_prev)
        h_scr[...] = h_new
        c_scr[...] = c_new
        hs_scr[t] = h_new
        return carry

    lax.fori_loop(0, chunk_steps, step, 0, unroll=unroll)

    # Dueling heads: one lane-dense batched matmul on the whole h slab.
    hs = hs_scr[...]                                  # (Tc, Bblk, H)
    bblk = hs.shape[1]
    hs2 = hs.reshape(chunk_steps * bblk, H)
    head = jnp.dot(hs2.astype(jnp.bfloat16), whead_ref[...],
                   preferred_element_type=jnp.float32) + bhead_ref[...]
    # head columns: [adv(0..A-1) | val(A) | zeros], so sum(head) - val == sum(adv)
    val = head[:, n_actions:n_actions + 1]
    adv_mean = (jnp.sum(head, axis=-1, keepdims=True) - val) * (1.0 / n_actions)
    q = head + (val - adv_mean)                       # cols >= A are discarded later
    q_ref[...] = q.reshape(chunk_steps, bblk, head_w)

    @pl.when(chunk == pl.num_programs(1) - 1)
    def _():
        hT_ref[...] = h_scr[...]
        cT_ref[...] = c_scr[...]


def r2d2_forward(x, params, hidden_state=None, *, max_chunk_steps=32):
    """x: (B, T, D) float32. Returns (q (B, T, A), (h (1,B,H), c (1,B,H)))."""
    B, T, D = x.shape
    H = params["w2"].shape[1]
    A = params["wadv"].shape[1]
    f32, bf16 = jnp.float32, jnp.bfloat16

    # ---- batch padding / 2-way batch split (uses v7x's second TC) ----------
    if B > 16:
        Bp = _round_up(B, 32)
        Bblk = Bp // 2
        n_bblk = 2
    else:
        Bp = _round_up(B, 16)        # multiple of 16: full bf16 sublane packing
        Bblk = Bp
        n_bblk = 1

    HEAD_W = _round_up(A + 1, 128)   # lane-dense dueling-head / q slab width
    F1 = 128                         # MLP hidden (64) padded to a full lane tile

    # ---- time-chunk size from a conservative VMEM budget (fits v7x 64 MiB) --
    fixed = (H * 4 * H * 2 + H * HEAD_W * 2 + HEAD_W * 4 + 8 * Bblk * H * 4)
    per_step = Bblk * (4 * H * 2 * 2 + H * 4 + HEAD_W * 4 * 2)
    tc_fit = max(1, (VMEM_BUDGET - fixed) // per_step)
    Tc = int(max(1, min(max_chunk_steps, T, tc_fit)))
    n_chunks = pl.cdiv(T, Tc)
    Tp = n_chunks * Tc

    # ---- Kernel A row tiling, decoupled from the recurrence chunk ----------
    Ta = int(max(1, min(Tp, 512 // Bp)))   # ~512-row tiles for the GEMM kernel
    TpA = _round_up(Tp, Ta)
    n_rows_a = TpA * Bp
    row_tile_a = Ta * Bp

    # ---- pack / pad inputs --------------------------------------------------
    x_tbd = jnp.transpose(x, (1, 0, 2)).astype(f32)                 # (T, B, D)
    x_pad = jnp.pad(x_tbd, ((0, TpA - T), (0, Bp - B), (0, 0)))
    x_rows = x_pad.reshape(n_rows_a, D)                             # row = t*Bp + b

    if hidden_state is None:
        h0 = jnp.zeros((Bp, H), f32)
        c0 = jnp.zeros((Bp, H), f32)
    else:
        h0 = jnp.pad(hidden_state[0].reshape(B, H).astype(f32), ((0, Bp - B), (0, 0)))
        c0 = jnp.pad(hidden_state[1].reshape(B, H).astype(f32), ((0, Bp - B), (0, 0)))

    # ---- weights: pad MLP hidden to 128, reorder gates [i,f,g,o]->[i,f,o,g],
    #      fold LSTM biases, pad the dueling head to a 128-wide slab ----------
    def reorder(w):
        return jnp.concatenate(
            [w[..., :2 * H], w[..., 3 * H:4 * H], w[..., 2 * H:3 * H]], axis=-1)

    w1 = jnp.pad(params["w1"], ((0, 0), (0, F1 - 64))).astype(bf16)
    b1 = jnp.pad(params["b1"], ((0, 0), (0, F1 - 64))).astype(f32)
    w2 = jnp.pad(params["w2"], ((0, F1 - 64), (0, 0))).astype(bf16)
    b2 = params["b2"].astype(f32)
    wih = reorder(params["wih"]).astype(bf16)
    whh = reorder(params["whh"]).astype(bf16)
    bg = reorder(params["bih"] + params["bhh"]).astype(f32)
    whead = jnp.pad(jnp.concatenate([params["wadv"], params["wval"]], axis=1),
                    ((0, 0), (0, HEAD_W - (A + 1)))).astype(bf16)
    bhead = jnp.pad(jnp.concatenate([params["badv"], params["bval"]], axis=1),
                    ((0, 0), (0, HEAD_W - (A + 1)))).astype(f32)

    full_a = lambda arr: pl.BlockSpec(arr.shape, lambda *_: (0,) * arr.ndim)

    # ---- Kernel A: batched MLP + gate projection (lane dense, parallel) -----
    gx_rows = pl.pallas_call(
        _gates_x_kernel,
        grid=(n_rows_a // row_tile_a,),
        in_specs=[
            pl.BlockSpec((row_tile_a, D), lambda i: (i, 0)),
            full_a(w1), full_a(b1), full_a(w2), full_a(b2), full_a(wih), full_a(bg),
        ],
        out_specs=pl.BlockSpec((row_tile_a, 4 * H), lambda i: (i, 0)),
        out_shape=jax.ShapeDtypeStruct((n_rows_a, 4 * H), bf16),
        compiler_params=pltpu.CompilerParams(
            dimension_semantics=("parallel",),
            vmem_limit_bytes=VMEM_LIMIT),
    )(x_rows, w1, b1, w2, b2, wih, bg)

    gx = gx_rows.reshape(TpA, Bp, 4 * H)   # free view of the same buffer

    # ---- Kernel B: recurrence over (batch blocks, time chunks) --------------
    kernel_b = functools.partial(
        _recurrence_kernel,
        seq_len=T, chunk_steps=Tc, hidden=H, n_actions=A, head_w=HEAD_W,
        mask_tail=(Tp != T), unroll=int(min(4, Tc)))

    q_pad, hT, cT = pl.pallas_call(
        kernel_b,
        grid=(n_bblk, n_chunks),
        in_specs=[
            pl.BlockSpec((Tc, Bblk, 4 * H), lambda b, i: (i, b, 0)),   # gates_x
            pl.BlockSpec((Bblk, H), lambda b, i: (b, 0)),              # h0
            pl.BlockSpec((Bblk, H), lambda b, i: (b, 0)),              # c0
            pl.BlockSpec((H, 4 * H), lambda b, i: (0, 0)),             # whh
            pl.BlockSpec((H, HEAD_W), lambda b, i: (0, 0)),            # whead
            pl.BlockSpec((1, HEAD_W), lambda b, i: (0, 0)),            # bhead
        ],
        out_specs=[
            pl.BlockSpec((Tc, Bblk, HEAD_W), lambda b, i: (i, b, 0)),  # q slab
            pl.BlockSpec((Bblk, H), lambda b, i: (b, 0)),              # final h
            pl.BlockSpec((Bblk, H), lambda b, i: (b, 0)),              # final c
        ],
        out_shape=[
            jax.ShapeDtypeStruct((Tp, Bp, HEAD_W), f32),
            jax.ShapeDtypeStruct((Bp, H), f32),
            jax.ShapeDtypeStruct((Bp, H), f32),
        ],
        scratch_shapes=[
            pltpu.VMEM((Bblk, H), f32),          # h carry
            pltpu.VMEM((Bblk, H), f32),          # c carry
            pltpu.VMEM((Tc, Bblk, H), f32),      # per-chunk h slab
        ],
        compiler_params=pltpu.CompilerParams(
            dimension_semantics=("parallel", "arbitrary"),
            vmem_limit_bytes=VMEM_LIMIT),
    )(gx, h0, c0, whh, whead, bhead)

    q = jnp.transpose(q_pad[:T, :B, :A], (1, 0, 2))                  # (B, T, A)
    new_hidden = (hT[:B][None], cT[:B][None])                        # (1, B, H)
    return q, new_hidden


def init_params(key, input_dim, hidden_dim, output_dim):
    ks = jax.random.split(key, 12)
    u = lambda k, shape, fan: jax.random.uniform(
        k, shape, jnp.float32, -1.0 / jnp.sqrt(fan), 1.0 / jnp.sqrt(fan))
    H = hidden_dim
    return {
        "w1": u(ks[0], (input_dim, 64), input_dim),
        "b1": u(ks[1], (1, 64), input_dim),
        "w2": u(ks[2], (64, H), 64),
        "b2": u(ks[3], (1, H), 64),
        "wih": u(ks[4], (H, 4 * H), H),
        "whh": u(ks[5], (H, 4 * H), H),
        "bih": u(ks[6], (1, 4 * H), H),
        "bhh": u(ks[7], (1, 4 * H), H),
        "wadv": u(ks[8], (H, output_dim), H),
        "badv": u(ks[9], (1, output_dim), H),
        "wval": u(ks[10], (H, 1), H),
        "bval": u(ks[11], (1, 1), H),
    }


def r2d2_reference(x, params):
    """Pure-JAX f32 reference (PyTorch gate order [i,f,g,o]) for validation."""
    f1 = jnp.maximum(x @ params["w1"] + params["b1"], 0.0)
    feat = f1 @ params["w2"] + params["b2"]
    B, H = feat.shape[0], params["w2"].shape[1]

    def step(carry, ft):
        h, c = carry
        gates = ft @ params["wih"] + params["bih"] + h @ params["whh"] + params["bhh"]
        i = jax.nn.sigmoid(gates[:, 0 * H:1 * H])
        f = jax.nn.sigmoid(gates[:, 1 * H:2 * H])
        g = jnp.tanh(gates[:, 2 * H:3 * H])
        o = jax.nn.sigmoid(gates[:, 3 * H:4 * H])
        c = f * c + i * g
        h = o * jnp.tanh(c)
        return (h, c), h

    (hT, cT), hs = jax.lax.scan(step, (jnp.zeros((B, H)), jnp.zeros((B, H))),
                                jnp.transpose(feat, (1, 0, 2)))
    lstm_out = jnp.transpose(hs, (1, 0, 2))
    adv = lstm_out @ params["wadv"] + params["badv"]
    val = lstm_out @ params["wval"] + params["bval"]
    q = val + (adv - adv.mean(axis=-1, keepdims=True))
    return q, (hT[None], cT[None])


if __name__ == "__main__":
    B, T, D, H, A = 2, 8, 16, 32, 4
    key = jax.random.PRNGKey(0)
    kx, kp = jax.random.split(key)
    x = jax.random.normal(kx, (B, T, D), jnp.float32)
    params = init_params(kp, D, H, A)

    q, (h_new, c_new) = r2d2_forward(x, params)
    jax.block_until_ready(q)
    jax.block_until_ready(h_new)
    jax.block_until_ready(c_new)

    q_ref, (h_ref, c_ref) = r2d2_reference(x, params)
    assert q.shape == (B, T, A) and h_new.shape == (1, B, H) and c_new.shape == (1, B, H)
    assert jnp.allclose(q, q_ref, rtol=1e-2, atol=1e-2)
    assert jnp.allclose(h_new, h_ref, rtol=1e-2, atol=1e-2)
    assert jnp.allclose(c_new, c_ref, rtol=1e-2, atol=1e-2)

    print("KERNEL_OK")
</pallas_src>

<mosaic_0001>
module attributes {stable_mosaic.version = 11 : i64} {
  func.func @_gates_x_kernel(%arg0: i32, %arg1: memref<128x16xf32, #tpu.memory_space<vmem>>, %arg2: memref<16x128xbf16, #tpu.memory_space<vmem>>, %arg3: memref<1x128xf32, #tpu.memory_space<vmem>>, %arg4: memref<128x32xbf16, #tpu.memory_space<vmem>>, %arg5: memref<1x32xf32, #tpu.memory_space<vmem>>, %arg6: memref<32x128xbf16, #tpu.memory_space<vmem>>, %arg7: memref<1x128xf32, #tpu.memory_space<vmem>>, %arg8: memref<128x128xbf16, #tpu.memory_space<vmem>>) attributes {dimension_semantics = [#tpu.dimension_semantics<parallel>], iteration_bounds = array<i64: 1>, scalar_prefetch = 0 : i64, scratch_operands = 0 : i64, tpu.core_type = #tpu.core_type<tc>, window_params = [{transform_indices = @transform_0, window_bounds = array<i64: 128, 16>}, {pipeline_mode = #tpu.pipeline_mode<synchronous>, transform_indices = @transform_1, window_bounds = array<i64: 16, 128>}, {pipeline_mode = #tpu.pipeline_mode<synchronous>, transform_indices = @transform_2, window_bounds = array<i64: 1, 128>}, {pipeline_mode = #tpu.pipeline_mode<synchronous>, transform_indices = @transform_3, window_bounds = array<i64: 128, 32>}, {pipeline_mode = #tpu.pipeline_mode<synchronous>, transform_indices = @transform_4, window_bounds = array<i64: 1, 32>}, {pipeline_mode = #tpu.pipeline_mode<synchronous>, transform_indices = @transform_5, window_bounds = array<i64: 32, 128>}, {pipeline_mode = #tpu.pipeline_mode<synchronous>, transform_indices = @transform_6, window_bounds = array<i64: 1, 128>}, {transform_indices = @transform_7, window_bounds = array<i64: 128, 128>}]} {
    %c0 = arith.constant 0 : index
    %c0_0 = arith.constant 0 : index
    %0 = vector.load %arg1[%c0, %c0_0] : memref<128x16xf32, #tpu.memory_space<vmem>>, vector<128x16xf32>
    %1 = arith.truncf %0 : vector<128x16xf32> to vector<128x16xbf16>
    %c0_1 = arith.constant 0 : index
    %c0_2 = arith.constant 0 : index
    %2 = vector.load %arg2[%c0_1, %c0_2] : memref<16x128xbf16, #tpu.memory_space<vmem>>, vector<16x128xbf16>
    %cst = arith.constant dense<0.000000e+00> : vector<128x128xf32>
    %3 = tpu.matmul %1, %2, %cst {dimension_numbers = #tpu.dot_dimension_numbers<[1], [0], [0], [1], [0, 0, 1, 1], [], []>} : vector<128x16xbf16>, vector<16x128xbf16>, vector<128x128xf32> -> vector<128x128xf32>
    %c0_3 = arith.constant 0 : index
    %c0_4 = arith.constant 0 : index
    %4 = vector.load %arg3[%c0_3, %c0_4] : memref<1x128xf32, #tpu.memory_space<vmem>>, vector<1x128xf32>
    %5 = vector.broadcast %4 : vector<1x128xf32> to vector<128x128xf32>
    %6 = arith.addf %3, %5 : vector<128x128xf32>
    %cst_5 = arith.constant 0.000000e+00 : f32
    %7 = vector.broadcast %cst_5 : f32 to vector<128x128xf32>
    %8 = arith.maximumf %6, %7 : vector<128x128xf32>
    %9 = arith.truncf %8 : vector<128x128xf32> to vector<128x128xbf16>
    %c0_6 = arith.constant 0 : index
    %c0_7 = arith.constant 0 : index
    %10 = vector.load %arg4[%c0_6, %c0_7] : memref<128x32xbf16, #tpu.memory_space<vmem>>, vector<128x32xbf16>
    %cst_8 = arith.constant dense<0.000000e+00> : vector<128x32xf32>
    %11 = tpu.matmul %9, %10, %cst_8 {dimension_numbers = #tpu.dot_dimension_numbers<[1], [0], [0], [1], [0, 0, 1, 1], [], []>} : vector<128x128xbf16>, vector<128x32xbf16>, vector<128x32xf32> -> vector<128x32xf32>
    %c0_9 = arith.constant 0 : index
    %c0_10 = arith.constant 0 : index
    %12 = vector.load %arg5[%c0_9, %c0_10] : memref<1x32xf32, #tpu.memory_space<vmem>>, vector<1x32xf32>
    %13 = vector.broadcast %12 : vector<1x32xf32> to vector<128x32xf32>
    %14 = arith.addf %11, %13 : vector<128x32xf32>
    %15 = arith.truncf %14 : vector<128x32xf32> to vector<128x32xbf16>
    %c0_11 = arith.constant 0 : index
    %c0_12 = arith.constant 0 : index
    %16 = vector.load %arg6[%c0_11, %c0_12] : memref<32x128xbf16, #tpu.memory_space<vmem>>, vector<32x128xbf16>
    %cst_13 = arith.constant dense<0.000000e+00> : vector<128x128xf32>
    %17 = tpu.matmul %15, %16, %cst_13 {dimension_numbers = #tpu.dot_dimension_numbers<[1], [0], [0], [1], [0, 0, 1, 1], [], []>} : vector<128x32xbf16>, vector<32x128xbf16>, vector<128x128xf32> -> vector<128x128xf32>
    %c0_14 = arith.constant 0 : index
    %c0_15 = arith.constant 0 : index
    %18 = vector.load %arg7[%c0_14, %c0_15] : memref<1x128xf32, #tpu.memory_space<vmem>>, vector<1x128xf32>
    %19 = vector.broadcast %18 : vector<1x128xf32> to vector<128x128xf32>
    %20 = arith.addf %17, %19 : vector<128x128xf32>
    %21 = arith.truncf %20 : vector<128x128xf32> to vector<128x128xbf16>
    %c0_16 = arith.constant 0 : index
    %c0_17 = arith.constant 0 : index
    %22 = vector.load %arg8[%c0_16, %c0_17] : memref<128x128xbf16, #tpu.memory_space<vmem>>, vector<128x128xbf16>
    tpu.vector_store %arg8[%c0_16, %c0_17], %21 {strides = array<i32>} : memref<128x128xbf16, #tpu.memory_space<vmem>>, vector<128x128xbf16>,
    return
  }
  func.func @transform_0(%arg0: i32) -> (i32, i32) {
    %c0_i32 = arith.constant 0 : i32
    %c0_i32_0 = arith.constant 0 : i32
    return %arg0, %c0_i32 : i32, i32
  }
  func.func @transform_1(%arg0: i32) -> (i32, i32) {
    %c0_i32 = arith.constant 0 : i32
    %c0_i32_0 = arith.constant 0 : i32
    %c0_i32_1 = arith.constant 0 : i32
    return %c0_i32, %c0_i32_0 : i32, i32
  }
  func.func @transform_2(%arg0: i32) -> (i32, i32) {
    %c0_i32 = arith.constant 0 : i32
    %c0_i32_0 = arith.constant 0 : i32
    %c0_i32_1 = arith.constant 0 : i32
    return %c0_i32, %c0_i32_0 : i32, i32
  }
  func.func @transform_3(%arg0: i32) -> (i32, i32) {
    %c0_i32 = arith.constant 0 : i32
    %c0_i32_0 = arith.constant 0 : i32
    %c0_i32_1 = arith.constant 0 : i32
    return %c0_i32, %c0_i32_0 : i32, i32
  }
  func.func @transform_4(%arg0: i32) -> (i32, i32) {
    %c0_i32 = arith.constant 0 : i32
    %c0_i32_0 = arith.constant 0 : i32
    %c0_i32_1 = arith.constant 0 : i32
    return %c0_i32, %c0_i32_0 : i32, i32
  }
  func.func @transform_5(%arg0: i32) -> (i32, i32) {
    %c0_i32 = arith.constant 0 : i32
    %c0_i32_0 = arith.constant 0 : i32
    %c0_i32_1 = arith.constant 0 : i32
    return %c0_i32, %c0_i32_0 : i32, i32
  }
  func.func @transform_6(%arg0: i32) -> (i32, i32) {
    %c0_i32 = arith.constant 0 : i32
    %c0_i32_0 = arith.constant 0 : i32
    %c0_i32_1 = arith.constant 0 : i32
    return %c0_i32, %c0_i32_0 : i32, i32
  }
  func.func @transform_7(%arg0: i32) -> (i32, i32) {
    %c0_i32 = arith.constant 0 : i32
    %c0_i32_0 = arith.constant 0 : i32
    return %arg0, %c0_i32 : i32, i32
  }
}

</mosaic_0001>

<bundles_post_ra>
// kernel: tpu_custom_call.1
= control target key start
LH: loop header
LB: loop body
LE: loop exit
PB: predicated region body
PF: predicated region fallthrough
CT: control target
= control target key end

     0   :  { %vm64_vm0 = vcmask 130048   ;;  %s761_s0 = inlined_call_operand.vmem [shape: f32[128,16], index: 0, kind: input, shape index: {}]   ;;  %s762_s1 = inlined_call_operand.vmem [shape: bf16[16,128], index: 1, kind: input, shape index: {}]   ;;  %s763_s2 = inlined_call_operand.vmem [shape: f32[1,128], index: 2, kind: input, shape index: {}]   ;;  %s764_s3 = inlined_call_operand.vmem [shape: bf16[128,32], index: 3, kind: input, shape index: {}]   ;;  %s765_s4 = inlined_call_operand.vmem [shape: f32[1,32], index: 4, kind: input, shape index: {}]   ;;  %s766_s5 = inlined_call_operand.vmem [shape: bf16[32,128], index: 5, kind: input, shape index: {}]   ;;  %s767_s6 = inlined_call_operand.vmem [shape: f32[1,128], index: 6, kind: input, shape index: {}]   ;;  %s768_s7 = inlined_call_operand.hbm [shape: bf16[128,128], index: 7, kind: output, shape index: {}]  }
   0x1   :  { %v491_v0 = vld [vmem:[%s762_s1] sm:$0xff]  ;;  %v29_v2 = vld [vmem:[%s761_s0 + $0x8] sm:$0xff] }
   0x2   :  { %v28_v1 = vld [vmem:[%s761_s0] sm:$0xff]  ;;  %96 = vmatpush.bf16.msra.mxu0 %v491_v0 }
   0x3   :  { %v44_v3 = vpack.c.bf16 %v29_v2, %v28_v1 }
   0x4   :  { %12 = vsyncpa [#allocation3], 0  ;;  %v30_v4 = vld [vmem:[%s761_s0 + $0x10] sm:$0xff]  ;;  %v31_v5 = vld [vmem:[%s761_s0 + $0x18] sm:$0xff]  ;;  %vm307_vm1 = vcmask 261120   ;;  %s419_s10 = sshll.u32 %s768_s7, 4  ;;  %s420_s10 = int_to_ptr.hbm [resolvable:$true] %s419_s10 }
   0x5   :  { %435 = vmatmul.msk.bf16.vlgmr.msra.gmra.mxu0 %vm64_vm0, %v44_v3  ;;  %v45_v6 = vpack.c.bf16 %v31_v5, %v30_v4  ;;  %v32_v7 = vld [vmem:[%s761_s0 + $0x20] sm:$0xff]  ;;  %v33_v8 = vld [vmem:[%s761_s0 + $0x28] sm:$0xff]  ;;  %v34_v10 = vld [vmem:[%s761_s0 + $0x30] sm:$0xff]  ;;  %s592_s11 = smov 64   ;;  %s593_s12 = smov 4  }
   0x6   :  { %v46_v9 = vpack.c.bf16 %v33_v8, %v32_v7  ;;  %v35_v11 = vld [vmem:[%s761_s0 + $0x38] sm:$0xff]  ;;  %v36_v13 = vld [vmem:[%s761_s0 + $0x40] sm:$0xff]  ;;  %v37_v14 = vld [vmem:[%s761_s0 + $0x48] sm:$0xff] }
   0x7   :  { %v47_v12 = vpack.c.bf16 %v35_v11, %v34_v10  ;;  %v48_v15 = vpack.c.bf16 %v37_v14, %v36_v13  ;;  %v499_v16 = vld [vmem:[%s764_s3 + $0x38] sm:$0xff]  ;;  %v38_v17 = vld [vmem:[%s761_s0 + $0x50] sm:$0xff]  ;;  %v497_v21 = vld [vmem:[%s764_s3 + $0x28] sm:$0xff] }
   0x8   :  { %230 = vmatpush.bf16.msra.mxu1 %v499_v16  ;;  %549 = vmatpush.bf16.msra.mxu3 %v499_v16  ;;  %v39_v18 = vld [vmem:[%s761_s0 + $0x58] sm:$0xff]  ;;  %v498_v20 = vld [vmem:[%s764_s3 + $0x30] sm:$0xff]  ;;  %v496_v22 = vld [vmem:[%s764_s3 + $0x20] sm:$0xff] }
   0x9   :  { %v49_v19 = vpack.c.bf16 %v39_v18, %v38_v17  ;;  %v40_v23 = vld [vmem:[%s761_s0 + $0x60] sm:$0xff]  ;;  %v41_v24 = vld [vmem:[%s761_s0 + $0x68] sm:$0xff]  ;;  %v495_v25 = vld [vmem:[%s764_s3 + $0x18] sm:$0xff] }
   0xa   :  { %v50_v26 = vpack.c.bf16 %v41_v24, %v40_v23  ;;  %v494_v27 = vld [vmem:[%s764_s3 + $0x10] sm:$0xff]  ;;  %v493_v28 = vld [vmem:[%s764_s3 + $0x8] sm:$0xff]  ;;  %v492_v29 = vld [vmem:[%s764_s3] sm:$0xff] }
   0xb   :  { %v42_v30 = vld [vmem:[%s761_s0 + $0x70] sm:$0xff]  ;;  %v43_v31 = vld [vmem:[%s761_s0 + $0x78] sm:$0xff]  ;;  %v720_v34 = vld [vmem:[%s763_s2] ss:$0 sm:$0xff] }
   0xc   :  { %231 = vmatpush.bf16.msra.mxu1 %v498_v20  ;;  %550 = vmatpush.bf16.msra.mxu3 %v498_v20  ;;  %v51_v32 = vpack.c.bf16 %v43_v31, %v42_v30 }
  0x10   :  { %232 = vmatpush.bf16.msra.mxu1 %v497_v21  ;;  %551 = vmatpush.bf16.msra.mxu3 %v497_v21  ;;  %v500_v21 = vld [vmem:[%s766_s5] sm:$0xff] }
  0x14   :  { %233 = vmatpush.bf16.msra.mxu1 %v496_v22  ;;  %552 = vmatpush.bf16.msra.mxu3 %v496_v22 }
  0x15   :  { %436 = vmatmul.msk.bf16.gmra.mxu0 %vm64_vm0, %v45_v6 }
  0x18   :  { %234 = vmatpush.bf16.msra.mxu1 %v495_v25  ;;  %553 = vmatpush.bf16.msra.mxu3 %v495_v25 }
  0x1c   :  { %235 = vmatpush.bf16.msra.mxu1 %v494_v27  ;;  %554 = vmatpush.bf16.msra.mxu3 %v494_v27 }
  0x20   :  { %236 = vmatpush.bf16.msra.mxu1 %v493_v28  ;;  %555 = vmatpush.bf16.msra.mxu3 %v493_v28 }
  0x24   :  { %237 = vmatpush.bf16.msra.mxu1 %v492_v29  ;;  %556 = vmatpush.bf16.msra.mxu3 %v492_v29  ;;  %v563_v29 = vld [vmem:[%s765_s4] ss:$0 sm:$0xff] }
  0x25   :  { %437 = vmatmul.msk.bf16.gmra.mxu0 %vm64_vm0, %v46_v9 }
  0x35   :  { %438 = vmatmul.msk.bf16.gmra.mxu0 %vm64_vm0, %v47_v12 }
  0x45   :  { %439 = vmatmul.msk.bf16.gmra.mxu0 %vm64_vm0, %v48_v15 }
  0x55   :  { %440 = vmatmul.msk.bf16.gmra.mxu0 %vm64_vm0, %v49_v19  ;;  %v501_v19 = vld [vmem:[%s766_s5 + $0x8] sm:$0xff] }
  0x56   :  { %338 = vmatpush.bf16.msra.mxu2 %v501_v19  ;;  %557 = vmatpush.bf16.msrb.mxu3 %v501_v19 }
  0x5a   :  { %339 = vmatpush.bf16.msra.mxu2 %v500_v21  ;;  %558 = vmatpush.bf16.msrb.mxu3 %v500_v21 }
  0x65   :  { %441 = vmatmul.msk.bf16.gmra.mxu0 %vm64_vm0, %v50_v26 }
  0x75   :  { %442 = vmatmul.msk.bf16.gmra.mxu0 %vm64_vm0, %v51_v32 }
  0x82   :  { %v98_v33 = vpop.f32.mrf.mxu0 }
  0x83   :  { %v99_v35 = vadd.f32 %v720_v34, %v98_v33 }
  0x85   :  { %v138_v38 = vmax.f32 %v99_v35, 0.0 }
  0x8a   :  { %v100_v36 = vpop.f32.mrf.mxu0 }
  0x8b   :  { %v101_v37 = vadd.f32 %v720_v34, %v100_v36 }
  0x8d   :  { %v139_v39 = vmax.f32 %v101_v37, 0.0 }
  0x8f   :  { %v154_v40 = vpack.c.bf16 %v139_v39, %v138_v38 }
  0x91   :  { %238 = vmatmul.bf16.vlgmr.msra.gmra.mxu1 %v154_v40 }
  0x92   :  { %v103_v41 = vpop.f32.mrf.mxu0 }
  0x93   :  { %v104_v42 = vadd.f32 %v720_v34, %v103_v41 }
  0x95   :  { %v140_v45 = vmax.f32 %v104_v42, 0.0 }
  0x9a   :  { %v105_v43 = vpop.f32.mrf.mxu0 }
  0x9b   :  { %v106_v44 = vadd.f32 %v720_v34, %v105_v43 }
  0x9d   :  { %v141_v46 = vmax.f32 %v106_v44, 0.0 }
  0x9f   :  { %v155_v47 = vpack.c.bf16 %v141_v46, %v140_v45 }
  0xa1   :  { %243 = vmatmul.bf16.gmra.mxu1 %v155_v47 }
  0xa2   :  { %v108_v48 = vpop.f32.mrf.mxu0 }
  0xa3   :  { %v109_v49 = vadd.f32 %v720_v34, %v108_v48 }
  0xa5   :  { %v142_v52 = vmax.f32 %v109_v49, 0.0 }
  0xaa   :  { %v110_v50 = vpop.f32.mrf.mxu0 }
  0xab   :  { %v111_v51 = vadd.f32 %v720_v34, %v110_v50 }
  0xad   :  { %v143_v53 = vmax.f32 %v111_v51, 0.0 }
  0xaf   :  { %v156_v54 = vpack.c.bf16 %v143_v53, %v142_v52 }
  0xb1   :  { %248 = vmatmul.bf16.gmra.mxu1 %v156_v54 }
  0xb2   :  { %v113_v55 = vpop.f32.mrf.mxu0 }
  0xb3   :  { %v114_v56 = vadd.f32 %v720_v34, %v113_v55 }
  0xb5   :  { %v144_v59 = vmax.f32 %v114_v56, 0.0 }
  0xba   :  { %v115_v57 = vpop.f32.mrf.mxu0 }
  0xbb   :  { %v116_v58 = vadd.f32 %v720_v34, %v115_v57 }
  0xbd   :  { %v145_v60 = vmax.f32 %v116_v58, 0.0 }
  0xbf   :  { %v157_v61 = vpack.c.bf16 %v145_v60, %v144_v59 }
  0xc1   :  { %253 = vmatmul.bf16.gmra.mxu1 %v157_v61 }
  0xc2   :  { %v118_v62 = vpop.f32.mrf.mxu0 }
  0xc3   :  { %v119_v63 = vadd.f32 %v720_v34, %v118_v62 }
  0xc5   :  { %v146_v2 = vmax.f32 %v119_v63, 0.0 }
  0xca   :  { %v120_v0 = vpop.f32.mrf.mxu0 }
  0xcb   :  { %v121_v1 = vadd.f32 %v720_v34, %v120_v0 }
  0xcd   :  { %v147_v3 = vmax.f32 %v121_v1, 0.0 }
  0xcf   :  { %v158_v4 = vpack.c.bf16 %v147_v3, %v146_v2 }
  0xd1   :  { %258 = vmatmul.bf16.gmra.mxu1 %v158_v4 }
  0xd2   :  { %v123_v5 = vpop.f32.mrf.mxu0 }
  0xd3   :  { %v124_v6 = vadd.f32 %v720_v34, %v123_v5 }
  0xd5   :  { %v148_v9 = vmax.f32 %v124_v6, 0.0  ;;  %v564_v6 = vld [vmem:[%s767_s6] ss:$0 sm:$0xff]  ;;  %s591_s6 = smov [#allocation2]  }
  0xd6   :  { %s417_s8 = sshll.u32 %s591_s6, 4  ;;  %s418_s8 = int_to_ptr.vmem [resolvable:$true] %s417_s8 }
  0xda   :  { %v125_v7 = vpop.f32.mrf.mxu0 }
  0xdb   :  { %v126_v8 = vadd.f32 %v720_v34, %v125_v7 }
  0xdd   :  { %v149_v10 = vmax.f32 %v126_v8, 0.0 }
  0xdf   :  { %v159_v11 = vpack.c.bf16 %v149_v10, %v148_v9 }
  0xe1   :  { %263 = vmatmul.bf16.gmra.mxu1 %v159_v11 }
  0xe2   :  { %v128_v12 = vpop.f32.mrf.mxu0 }
  0xe3   :  { %v129_v13 = vadd.f32 %v720_v34, %v128_v12 }
  0xe5   :  { %v150_v16 = vmax.f32 %v129_v13, 0.0 }
  0xea   :  { %v130_v14 = vpop.f32.mrf.mxu0 }
  0xeb   :  { %v131_v15 = vadd.f32 %v720_v34, %v130_v14 }
  0xed   :  { %v151_v17 = vmax.f32 %v131_v15, 0.0 }
  0xef   :  { %v160_v18 = vpack.c.bf16 %v151_v17, %v150_v16 }
  0xf1   :  { %268 = vmatmul.bf16.vlgmr.msra.gmra.mxu3 %v160_v18 }
  0xf2   :  { %v133_v20 = vpop.f32.mrf.mxu0 }
  0xf3   :  { %v134_v22 = vadd.f32 %v720_v34, %v133_v20 }
  0xf5   :  { %v152_v25 = vmax.f32 %v134_v22, 0.0 }
  0xfa   :  { %v135_v23 = vpop.f32.mrf.mxu0 }
  0xfb   :  { %v136_v24 = vadd.f32 %v720_v34, %v135_v23 }
  0xfd   :  { %v153_v26 = vmax.f32 %v136_v24, 0.0 }
  0xff   :  { %v161_v27 = vpack.c.bf16 %v153_v26, %v152_v25 }
 0x101   :  { %273 = vmatmul.bf16.gmra.mxu3 %v161_v27 }
 0x10e   :  { %v239_v28 = vpop.f32.mrf.mxu1 }
 0x10f   :  { %v240_v31 = vadd.f32 %v563_v29, %v239_v28 }
 0x116   :  { %v241_v30 = vpop.f32.mrf.mxu1 }
 0x117   :  { %v242_v32 = vadd.f32 %v563_v29, %v241_v30 }
 0x119   :  { %v279_v33 = vpack.c.bf16 %v242_v32, %v240_v31 }
 0x11b   :  { %483 = vmatmul.msk.bf16.vlgmr.msra.gmra.mxu2 %vm307_vm1, %v279_v33 }
 0x11e   :  { %v244_v35 = vpop.f32.mrf.mxu1 }
 0x11f   :  { %v245_v37 = vadd.f32 %v563_v29, %v244_v35 }
 0x126   :  { %v246_v36 = vpop.f32.mrf.mxu1 }
 0x127   :  { %v247_v34 = vadd.f32 %v563_v29, %v246_v36 }
 0x129   :  { %v280_v38 = vpack.c.bf16 %v247_v34, %v245_v37 }
 0x12b   :  { %484 = vmatmul.msk.bf16.gmra.mxu2 %vm307_vm1, %v280_v38 }
 0x12e   :  { %v249_v39 = vpop.f32.mrf.mxu1 }
 0x12f   :  { %v250_v41 = vadd.f32 %v563_v29, %v249_v39 }
 0x136   :  { %v251_v40 = vpop.f32.mrf.mxu1 }
 0x137   :  { %v252_v42 = vadd.f32 %v563_v29, %v251_v40 }
 0x139   :  { %v281_v43 = vpack.c.bf16 %v252_v42, %v250_v41 }
 0x13b   :  { %485 = vmatmul.msk.bf16.gmra.mxu2 %vm307_vm1, %v281_v43 }
 0x13e   :  { %v254_v44 = vpop.f32.mrf.mxu1 }
 0x13f   :  { %v255_v46 = vadd.f32 %v563_v29, %v254_v44 }
 0x146   :  { %v256_v45 = vpop.f32.mrf.mxu1 }
 0x147   :  { %v257_v47 = vadd.f32 %v563_v29, %v256_v45 }
 0x149   :  { %v282_v48 = vpack.c.bf16 %v257_v47, %v255_v46 }
 0x14b   :  { %486 = vmatmul.msk.bf16.gmra.mxu2 %vm307_vm1, %v282_v48 }
 0x14e   :  { %v259_v49 = vpop.f32.mrf.mxu1 }
 0x14f   :  { %v260_v51 = vadd.f32 %v563_v29, %v259_v49 }
 0x156   :  { %v261_v50 = vpop.f32.mrf.mxu1 }
 0x157   :  { %v262_v52 = vadd.f32 %v563_v29, %v261_v50 }
 0x159   :  { %v283_v53 = vpack.c.bf16 %v262_v52, %v260_v51 }
 0x15b   :  { %487 = vmatmul.msk.bf16.gmra.mxu2 %vm307_vm1, %v283_v53 }
 0x15e   :  { %v264_v54 = vpop.f32.mrf.mxu1 }
 0x15f   :  { %v265_v56 = vadd.f32 %v563_v29, %v264_v54 }
 0x166   :  { %v266_v55 = vpop.f32.mrf.mxu1 }
 0x167   :  { %v267_v57 = vadd.f32 %v563_v29, %v266_v55 }
 0x169   :  { %v284_v58 = vpack.c.bf16 %v267_v57, %v265_v56 }
 0x16b   :  { %488 = vmatmul.msk.bf16.gmra.mxu2 %vm307_vm1, %v284_v58 }
 0x174   :  { %v269_v59 = vpop.f32.mrf.mxu3 }
 0x175   :  { %v270_v61 = vadd.f32 %v563_v29, %v269_v59 }
 0x17c   :  { %v271_v60 = vpop.f32.mrf.mxu3 }
 0x17d   :  { %v272_v62 = vadd.f32 %v563_v29, %v271_v60 }
 0x17f   :  { %v285_v63 = vpack.c.bf16 %v272_v62, %v270_v61 }
 0x181   :  { %489 = vmatmul.msk.bf16.gmra.mxu2 %vm307_vm1, %v285_v63 }
 0x184   :  { %v274_v0 = vpop.f32.mrf.mxu3 }
 0x185   :  { %v275_v2 = vadd.f32 %v563_v29, %v274_v0 }
 0x18c   :  { %v276_v1 = vpop.f32.mrf.mxu3 }
 0x18d   :  { %v277_v3 = vadd.f32 %v563_v29, %v276_v1 }
 0x18f   :  { %v286_v4 = vpack.c.bf16 %v277_v3, %v275_v2 }
 0x191   :  { %490 = vmatmul.msk.bf16.vlgmr.msrb.gmra.mxu3 %vm307_vm1, %v286_v4 }
 0x19e   :  { %v341_v5 = vpop.f32.mrf.mxu2 }
 0x19f   :  { %v342_v8 = vadd.f32 %v564_v6, %v341_v5 }
 0x1a6   :  { %v343_v7 = vpop.f32.mrf.mxu2 }
 0x1a7   :  { %v344_v9 = vadd.f32 %v564_v6, %v343_v7 }
 0x1a9   :  { %v505_v10 = vpack.c.bf16 %v344_v9, %v342_v8 }
 0x1ab   :  { %506 = vst [vmem:[#allocation2] sm:$0xff] %v505_v10  }
 0x1ae   :  { %v346_v11 = vpop.f32.mrf.mxu2 }
 0x1af   :  { %v347_v13 = vadd.f32 %v564_v6, %v346_v11 }
 0x1b6   :  { %v348_v12 = vpop.f32.mrf.mxu2 }
 0x1b7   :  { %v349_v14 = vadd.f32 %v564_v6, %v348_v12 }
 0x1b9   :  { %v510_v15 = vpack.c.bf16 %v349_v14, %v347_v13 }
 0x1bb   :  { %542 = vst [vmem:[#allocation2 + $0x8] sm:$0xff] %v510_v15  }
 0x1be   :  { %v351_v16 = vpop.f32.mrf.mxu2 }
 0x1bf   :  { %v352_v18 = vadd.f32 %v564_v6, %v351_v16 }
 0x1c6   :  { %v353_v17 = vpop.f32.mrf.mxu2 }
 0x1c7   :  { %v354_v19 = vadd.f32 %v564_v6, %v353_v17 }
 0x1c9   :  { %v515_v20 = vpack.c.bf16 %v354_v19, %v352_v18 }
 0x1cb   :  { %543 = vst [vmem:[#allocation2 + $0x10] sm:$0xff] %v515_v20  }
 0x1ce   :  { %v356_v21 = vpop.f32.mrf.mxu2 }
 0x1cf   :  { %v357_v23 = vadd.f32 %v564_v6, %v356_v21 }
 0x1d6   :  { %v358_v22 = vpop.f32.mrf.mxu2 }
 0x1d7   :  { %v359_v24 = vadd.f32 %v564_v6, %v358_v22 }
 0x1d9   :  { %v520_v25 = vpack.c.bf16 %v359_v24, %v357_v23 }
 0x1db   :  { %544 = vst [vmem:[#allocation2 + $0x18] sm:$0xff] %v520_v25  }
 0x1de   :  { %v361_v26 = vpop.f32.mrf.mxu2 }
 0x1df   :  { %v362_v28 = vadd.f32 %v564_v6, %v361_v26 }
 0x1e6   :  { %v363_v27 = vpop.f32.mrf.mxu2 }
 0x1e7   :  { %v364_v29 = vadd.f32 %v564_v6, %v363_v27 }
 0x1e9   :  { %v525_v30 = vpack.c.bf16 %v364_v29, %v362_v28 }
 0x1eb   :  { %545 = vst [vmem:[#allocation2 + $0x20] sm:$0xff] %v525_v30  }
 0x1ee   :  { %v366_v31 = vpop.f32.mrf.mxu2 }
 0x1ef   :  { %v367_v33 = vadd.f32 %v564_v6, %v366_v31 }
 0x1f6   :  { %v368_v32 = vpop.f32.mrf.mxu2 }
 0x1f7   :  { %v369_v35 = vadd.f32 %v564_v6, %v368_v32 }
 0x1f9   :  { %v530_v36 = vpack.c.bf16 %v369_v35, %v367_v33 }
 0x1fb   :  { %546 = vst [vmem:[#allocation2 + $0x28] sm:$0xff] %v530_v36  }
 0x204   :  { %v371_v37 = vpop.f32.mrf.mxu2 }
 0x205   :  { %v372_v38 = vadd.f32 %v564_v6, %v371_v37 }
 0x20c   :  { %v373_v34 = vpop.f32.mrf.mxu2 }
 0x20d   :  { %v374_v39 = vadd.f32 %v564_v6, %v373_v34 }
 0x20f   :  { %v535_v40 = vpack.c.bf16 %v374_v39, %v372_v38 }
 0x211   :  { %547 = vst [vmem:[#allocation2 + $0x30] sm:$0xff] %v535_v40  }
 0x214   :  { %v376_v41 = vpop.f32.mrf.mxu3 }
 0x215   :  { %v377_v43 = vadd.f32 %v564_v6, %v376_v41 }
 0x21c   :  { %v378_v42 = vpop.f32.mrf.mxu3 }
 0x21d   :  { %v379_v44 = vadd.f32 %v564_v6, %v378_v42 }
 0x21f   :  { %v540_v45 = vpack.c.bf16 %v379_v44, %v377_v43 }
 0x221   :  { %548 = vst [vmem:[#allocation2 + $0x38] sm:$0xff] %v540_v45  }
 0x222   :  { %425 = dma.vmem_to_hbm [thread:$0]  %s418_s8, 1024, %s420_s10, [#allocation3], %s592_s11, %s592_s11, %s593_s12  }
 0x223   :  { %589 = dma.done.wait [#allocation3], 1024  }
 0x224   :  { %590 = vsyncadd [#allocation3], 4294966272 }
 0x225   :  { %430 = vsyncpa [#allocation3], 1 }

</bundles_post_ra>
